<compile_context>
chip_gen: v7x
topology: tpu7x:2x2x1
jax: 0.10.0
libtpu: 0.0.40
codegen_flags: <defaults>
</compile_context>

<pallas_src>
import math
from functools import partial

import jax
import jax.numpy as jnp
from jax.experimental import pallas as pl
from jax.experimental.pallas import tpu as pltpu

LANE = 128
SUBLANE = 8


def _round_up(a: int, b: int) -> int:
    return (a + b - 1) // b * b


# ----------------------------- Pallas kernel ------------------------------
def denoiser_kernel(t_ref,                    # SMEM [B_pad] int32  (scalar prefetch)
                    x_ref,                    # VMEM [TB, DP]
                    te_tab_ref,               # VMEM [n_steps, EP]  precomputed relu(emb@Wet+bet)
                    wo_ref, bo_ref,           # VMEM [DP, EP], [1, EP]   (open)
                    we_ref, be_ref,           # VMEM [EP, EP], [1, EP]   (expand)
                    wc_ref, bc_ref,           # VMEM [EP, DP], [1, DP]   (close)
                    out_ref,                  # VMEM [TB, DP]
                    te_scratch):              # VMEM [TB, EP]
    tb = x_ref.shape[0]
    base = pl.program_id(0) * tb

    # In-kernel gather of precomputed, already-transformed time embeddings.
    for r in range(tb):
        te_scratch[pl.ds(r, 1), :] = te_tab_ref[pl.ds(t_ref[base + r], 1), :]

    # h = relu(x @ Wo + bo) + te
    h = jnp.dot(x_ref[...], wo_ref[...], preferred_element_type=jnp.float32)
    h = jnp.maximum(h + bo_ref[...], 0.0)
    h = h + te_scratch[...]

    # h = relu(h @ We + be)
    h = jnp.dot(h, we_ref[...], preferred_element_type=jnp.float32)
    h = jnp.maximum(h + be_ref[...], 0.0)

    # out = h @ Wc + bc
    out = jnp.dot(h, wc_ref[...], preferred_element_type=jnp.float32)
    out_ref[...] = (out + bc_ref[...]).astype(out_ref.dtype)


# ------------------------------ parameter setup ----------------------------
def make_time_embedding_table(n_steps: int, embed_dim: int) -> jnp.ndarray:
    """Sinusoidal embedding table, identical to TimeEmbedding.__init__."""
    positions = jnp.arange(n_steps, dtype=jnp.float32)[:, None]
    div_term = jnp.exp(jnp.arange(0, embed_dim, 2, dtype=jnp.float32)
                       * (-math.log(10000.0) / embed_dim))
    emb = jnp.zeros((n_steps, embed_dim), dtype=jnp.float32)
    emb = emb.at[:, 0::2].set(jnp.sin(positions * div_term))
    emb = emb.at[:, 1::2].set(jnp.cos(positions * div_term))
    return emb


def init_denoiser_params(key, input_dim: int, n_steps: int, expander: int = 2):
    """Deterministic synthetic parameters (PyTorch-Linear-style uniform init)."""
    expander_dim = round(input_dim * expander / 2) * 2
    keys = jax.random.split(key, 8)

    def linear(kw, kb, fan_in, fan_out):
        bound = 1.0 / math.sqrt(fan_in)
        w = jax.random.uniform(kw, (fan_in, fan_out), jnp.float32, -bound, bound)
        b = jax.random.uniform(kb, (1, fan_out), jnp.float32, -bound, bound)
        return w, b

    p = {}
    p["open_w"], p["open_b"] = linear(keys[0], keys[1], input_dim, expander_dim)
    p["et_w"], p["et_b"] = linear(keys[2], keys[3], expander_dim, expander_dim)
    p["exp_w"], p["exp_b"] = linear(keys[4], keys[5], expander_dim, expander_dim)
    p["close_w"], p["close_b"] = linear(keys[6], keys[7], expander_dim, input_dim)
    p["time_table"] = make_time_embedding_table(n_steps, expander_dim)
    return p, expander_dim


def prepare_kernel_params(raw, input_dim: int, expander_dim: int):
    """Fold the embedding-transform branch and zero-pad feature dims to 128 lanes."""
    DP = _round_up(input_dim, LANE)
    EP = _round_up(expander_dim, LANE)

    def pad2(a, rows, cols):
        return jnp.pad(a, ((0, rows - a.shape[0]), (0, cols - a.shape[1])))

    # te_table = relu(embedding_transform(time_embedding(all steps)))  [n_steps, E]
    te_table = jnp.maximum(raw["time_table"] @ raw["et_w"] + raw["et_b"], 0.0)

    kp = {
        "open_w":  pad2(raw["open_w"], DP, EP),
        "open_b":  pad2(raw["open_b"], 1, EP),
        "exp_w":   pad2(raw["exp_w"], EP, EP),
        "exp_b":   pad2(raw["exp_b"], 1, EP),
        "close_w": pad2(raw["close_w"], EP, DP),
        "close_b": pad2(raw["close_b"], 1, DP),
        "te_table": pad2(te_table, te_table.shape[0], EP),
    }
    return kp, DP, EP


# ------------------------------ Python wrapper -----------------------------
@partial(jax.jit, static_argnames=("input_dim",))
def denoiser_forward(kparams, x, t, *, input_dim):
    """x: [B, input_dim] f32, t: [B] int -> [B, input_dim] f32."""
    B = x.shape[0]
    DP, EP = kparams["open_w"].shape
    n_steps = kparams["te_table"].shape[0]

    TB = min(LANE, _round_up(B, SUBLANE))
    B_pad = _round_up(B, TB)
    num_blocks = B_pad // TB

    x_pad = jnp.pad(x.astype(jnp.float32),
                    ((0, B_pad - B), (0, DP - input_dim)))
    t_pad = jnp.pad(t.astype(jnp.int32), (0, B_pad - B))

    flops = 2 * B_pad * (DP * EP + EP * EP + EP * DP)
    bytes_accessed = 4 * (2 * B_pad * DP + n_steps * EP
                          + DP * EP + EP * EP + EP * DP + 2 * EP + DP + B_pad)

    grid_spec = pltpu.PrefetchScalarGridSpec(
        num_scalar_prefetch=1,
        grid=(num_blocks,),
        in_specs=[
            pl.BlockSpec((TB, DP), lambda i, t_s: (i, 0)),        # x tile
            pl.BlockSpec((n_steps, EP), lambda i, t_s: (0, 0)),   # te table (resident)
            pl.BlockSpec((DP, EP), lambda i, t_s: (0, 0)),        # open W
            pl.BlockSpec((1, EP), lambda i, t_s: (0, 0)),         # open b
            pl.BlockSpec((EP, EP), lambda i, t_s: (0, 0)),        # expand W
            pl.BlockSpec((1, EP), lambda i, t_s: (0, 0)),         # expand b
            pl.BlockSpec((EP, DP), lambda i, t_s: (0, 0)),        # close W
            pl.BlockSpec((1, DP), lambda i, t_s: (0, 0)),         # close b
        ],
        out_specs=pl.BlockSpec((TB, DP), lambda i, t_s: (i, 0)),
        scratch_shapes=[pltpu.VMEM((TB, EP), jnp.float32)],
    )

    out_pad = pl.pallas_call(
        denoiser_kernel,
        out_shape=jax.ShapeDtypeStruct((B_pad, DP), jnp.float32),
        grid_spec=grid_spec,
        compiler_params=pltpu.CompilerParams(
            dimension_semantics=("parallel",)),
        cost_estimate=pl.CostEstimate(flops=flops, transcendentals=0,
                                      bytes_accessed=bytes_accessed),
    )(t_pad, x_pad,
      kparams["te_table"],
      kparams["open_w"], kparams["open_b"],
      kparams["exp_w"], kparams["exp_b"],
      kparams["close_w"], kparams["close_b"])

    return out_pad[:B, :input_dim]


def denoiser_reference(params, x, t):
    """Pure-JAX reference matching the PyTorch forward exactly (unfolded)."""
    h = jnp.maximum(x @ params["open_w"] + params["open_b"], 0.0)
    temb = jnp.take(params["time_table"], t, axis=0)
    te = jnp.maximum(temb @ params["et_w"] + params["et_b"], 0.0)
    h = h + te
    h = jnp.maximum(h @ params["exp_w"] + params["exp_b"], 0.0)
    return h @ params["close_w"] + params["close_b"]


# --------------------------------- main ------------------------------------
if __name__ == "__main__":
    key = jax.random.PRNGKey(0)
    k_param, k_x, k_t = jax.random.split(key, 3)

    B = 8            # batch
    INPUT_DIM = 32   # variant corpus dimension
    N_STEPS = 16     # diffusion time steps
    EXPANDER = 2     # -> expander_dim = 64

    raw_params, expander_dim = init_denoiser_params(k_param, INPUT_DIM, N_STEPS, EXPANDER)
    kparams, DP, EP = prepare_kernel_params(raw_params, INPUT_DIM, expander_dim)

    x = jax.random.normal(k_x, (B, INPUT_DIM), dtype=jnp.float32)
    t = jax.random.randint(k_t, (B,), 0, N_STEPS, dtype=jnp.int32)

    out = denoiser_forward(kparams, x, t, input_dim=INPUT_DIM)
    out = jax.block_until_ready(out)

    ref = denoiser_reference(raw_params, x, t)
    assert out.shape == (B, INPUT_DIM)
    assert jnp.allclose(out, ref, atol=1e-5, rtol=1e-5), "mismatch vs reference"

    print("KERNEL_OK")
</pallas_src>

<mosaic_0001>
module attributes {stable_mosaic.version = 11 : i64} {
  func.func @denoiser_kernel(%arg0: i32, %arg1: memref<8xi32, #tpu.memory_space<smem>>, %arg2: memref<8x128xf32, #tpu.memory_space<vmem>>, %arg3: memref<16x128xf32, #tpu.memory_space<vmem>>, %arg4: memref<128x128xf32, #tpu.memory_space<vmem>>, %arg5: memref<1x128xf32, #tpu.memory_space<vmem>>, %arg6: memref<128x128xf32, #tpu.memory_space<vmem>>, %arg7: memref<1x128xf32, #tpu.memory_space<vmem>>, %arg8: memref<128x128xf32, #tpu.memory_space<vmem>>, %arg9: memref<1x128xf32, #tpu.memory_space<vmem>>, %arg10: memref<8x128xf32, #tpu.memory_space<vmem>>, %arg11: memref<8x128xf32, #tpu.memory_space<vmem>>) attributes {dimension_semantics = [#tpu.dimension_semantics<parallel>], iteration_bounds = array<i64: 1>, scalar_prefetch = 1 : i64, scratch_operands = 1 : i64, tpu.core_type = #tpu.core_type<tc>, window_params = [{transform_indices = @transform_0, window_bounds = array<i64: 8, 128>}, {pipeline_mode = #tpu.pipeline_mode<synchronous>, transform_indices = @transform_1, window_bounds = array<i64: 16, 128>}, {pipeline_mode = #tpu.pipeline_mode<synchronous>, transform_indices = @transform_2, window_bounds = array<i64: 128, 128>}, {pipeline_mode = #tpu.pipeline_mode<synchronous>, transform_indices = @transform_3, window_bounds = array<i64: 1, 128>}, {pipeline_mode = #tpu.pipeline_mode<synchronous>, transform_indices = @transform_4, window_bounds = array<i64: 128, 128>}, {pipeline_mode = #tpu.pipeline_mode<synchronous>, transform_indices = @transform_5, window_bounds = array<i64: 1, 128>}, {pipeline_mode = #tpu.pipeline_mode<synchronous>, transform_indices = @transform_6, window_bounds = array<i64: 128, 128>}, {pipeline_mode = #tpu.pipeline_mode<synchronous>, transform_indices = @transform_7, window_bounds = array<i64: 1, 128>}, {transform_indices = @transform_8, window_bounds = array<i64: 8, 128>}]} {
    %c8_i32 = arith.constant 8 : i32
    %0 = arith.muli %arg0, %c8_i32 : i32
    %c0_i32 = arith.constant 0 : i32
    %1 = arith.addi %0, %c0_i32 : i32
    %2 = arith.index_cast %1 : i32 to index
    %3 = memref.load %arg1[%2] : memref<8xi32, #tpu.memory_space<smem>>
    %4 = arith.index_cast %3 : i32 to index
    %c0 = arith.constant 0 : index
    %5 = vector.load %arg3[%4, %c0] : memref<16x128xf32, #tpu.memory_space<vmem>>, vector<1x128xf32>
    %c0_0 = arith.constant 0 : index
    %c0_1 = arith.constant 0 : index
    %6 = vector.load %arg11[%c0_0, %c0_1] : memref<8x128xf32, #tpu.memory_space<vmem>>, vector<1x128xf32>
    tpu.vector_store %arg11[%c0_0, %c0_1], %5 {strides = array<i32>} : memref<8x128xf32, #tpu.memory_space<vmem>>, vector<1x128xf32>,
    %c1_i32 = arith.constant 1 : i32
    %7 = arith.addi %0, %c1_i32 : i32
    %8 = arith.index_cast %7 : i32 to index
    %9 = memref.load %arg1[%8] : memref<8xi32, #tpu.memory_space<smem>>
    %10 = arith.index_cast %9 : i32 to index
    %c0_2 = arith.constant 0 : index
    %11 = vector.load %arg3[%10, %c0_2] : memref<16x128xf32, #tpu.memory_space<vmem>>, vector<1x128xf32>
    %c1 = arith.constant 1 : index
    %c0_3 = arith.constant 0 : index
    %12 = vector.load %arg11[%c1, %c0_3] : memref<8x128xf32, #tpu.memory_space<vmem>>, vector<1x128xf32>
    tpu.vector_store %arg11[%c1, %c0_3], %11 {strides = array<i32>} : memref<8x128xf32, #tpu.memory_space<vmem>>, vector<1x128xf32>,
    %c2_i32 = arith.constant 2 : i32
    %13 = arith.addi %0, %c2_i32 : i32
    %14 = arith.index_cast %13 : i32 to index
    %15 = memref.load %arg1[%14] : memref<8xi32, #tpu.memory_space<smem>>
    %16 = arith.index_cast %15 : i32 to index
    %c0_4 = arith.constant 0 : index
    %17 = vector.load %arg3[%16, %c0_4] : memref<16x128xf32, #tpu.memory_space<vmem>>, vector<1x128xf32>
    %c2 = arith.constant 2 : index
    %c0_5 = arith.constant 0 : index
    %18 = vector.load %arg11[%c2, %c0_5] : memref<8x128xf32, #tpu.memory_space<vmem>>, vector<1x128xf32>
    tpu.vector_store %arg11[%c2, %c0_5], %17 {strides = array<i32>} : memref<8x128xf32, #tpu.memory_space<vmem>>, vector<1x128xf32>,
    %c3_i32 = arith.constant 3 : i32
    %19 = arith.addi %0, %c3_i32 : i32
    %20 = arith.index_cast %19 : i32 to index
    %21 = memref.load %arg1[%20] : memref<8xi32, #tpu.memory_space<smem>>
    %22 = arith.index_cast %21 : i32 to index
    %c0_6 = arith.constant 0 : index
    %23 = vector.load %arg3[%22, %c0_6] : memref<16x128xf32, #tpu.memory_space<vmem>>, vector<1x128xf32>
    %c3 = arith.constant 3 : index
    %c0_7 = arith.constant 0 : index
    %24 = vector.load %arg11[%c3, %c0_7] : memref<8x128xf32, #tpu.memory_space<vmem>>, vector<1x128xf32>
    tpu.vector_store %arg11[%c3, %c0_7], %23 {strides = array<i32>} : memref<8x128xf32, #tpu.memory_space<vmem>>, vector<1x128xf32>,
    %c4_i32 = arith.constant 4 : i32
    %25 = arith.addi %0, %c4_i32 : i32
    %26 = arith.index_cast %25 : i32 to index
    %27 = memref.load %arg1[%26] : memref<8xi32, #tpu.memory_space<smem>>
    %28 = arith.index_cast %27 : i32 to index
    %c0_8 = arith.constant 0 : index
    %29 = vector.load %arg3[%28, %c0_8] : memref<16x128xf32, #tpu.memory_space<vmem>>, vector<1x128xf32>
    %c4 = arith.constant 4 : index
    %c0_9 = arith.constant 0 : index
    %30 = vector.load %arg11[%c4, %c0_9] : memref<8x128xf32, #tpu.memory_space<vmem>>, vector<1x128xf32>
    tpu.vector_store %arg11[%c4, %c0_9], %29 {strides = array<i32>} : memref<8x128xf32, #tpu.memory_space<vmem>>, vector<1x128xf32>,
    %c5_i32 = arith.constant 5 : i32
    %31 = arith.addi %0, %c5_i32 : i32
    %32 = arith.index_cast %31 : i32 to index
    %33 = memref.load %arg1[%32] : memref<8xi32, #tpu.memory_space<smem>>
    %34 = arith.index_cast %33 : i32 to index
    %c0_10 = arith.constant 0 : index
    %35 = vector.load %arg3[%34, %c0_10] : memref<16x128xf32, #tpu.memory_space<vmem>>, vector<1x128xf32>
    %c5 = arith.constant 5 : index
    %c0_11 = arith.constant 0 : index
    %36 = vector.load %arg11[%c5, %c0_11] : memref<8x128xf32, #tpu.memory_space<vmem>>, vector<1x128xf32>
    tpu.vector_store %arg11[%c5, %c0_11], %35 {strides = array<i32>} : memref<8x128xf32, #tpu.memory_space<vmem>>, vector<1x128xf32>,
    %c6_i32 = arith.constant 6 : i32
    %37 = arith.addi %0, %c6_i32 : i32
    %38 = arith.index_cast %37 : i32 to index
    %39 = memref.load %arg1[%38] : memref<8xi32, #tpu.memory_space<smem>>
    %40 = arith.index_cast %39 : i32 to index
    %c0_12 = arith.constant 0 : index
    %41 = vector.load %arg3[%40, %c0_12] : memref<16x128xf32, #tpu.memory_space<vmem>>, vector<1x128xf32>
    %c6 = arith.constant 6 : index
    %c0_13 = arith.constant 0 : index
    %42 = vector.load %arg11[%c6, %c0_13] : memref<8x128xf32, #tpu.memory_space<vmem>>, vector<1x128xf32>
    tpu.vector_store %arg11[%c6, %c0_13], %41 {strides = array<i32>} : memref<8x128xf32, #tpu.memory_space<vmem>>, vector<1x128xf32>,
    %c7_i32 = arith.constant 7 : i32
    %43 = arith.addi %0, %c7_i32 : i32
    %44 = arith.index_cast %43 : i32 to index
    %45 = memref.load %arg1[%44] : memref<8xi32, #tpu.memory_space<smem>>
    %46 = arith.index_cast %45 : i32 to index
    %c0_14 = arith.constant 0 : index
    %47 = vector.load %arg3[%46, %c0_14] : memref<16x128xf32, #tpu.memory_space<vmem>>, vector<1x128xf32>
    %c7 = arith.constant 7 : index
    %c0_15 = arith.constant 0 : index
    %48 = vector.load %arg11[%c7, %c0_15] : memref<8x128xf32, #tpu.memory_space<vmem>>, vector<1x128xf32>
    tpu.vector_store %arg11[%c7, %c0_15], %47 {strides = array<i32>} : memref<8x128xf32, #tpu.memory_space<vmem>>, vector<1x128xf32>,
    %c0_16 = arith.constant 0 : index
    %c0_17 = arith.constant 0 : index
    %49 = vector.load %arg2[%c0_16, %c0_17] : memref<8x128xf32, #tpu.memory_space<vmem>>, vector<8x128xf32>
    %c0_18 = arith.constant 0 : index
    %c0_19 = arith.constant 0 : index
    %50 = vector.load %arg4[%c0_18, %c0_19] : memref<128x128xf32, #tpu.memory_space<vmem>>, vector<128x128xf32>
    %cst = arith.constant dense<0.000000e+00> : vector<8x128xf32>
    %51 = tpu.matmul %49, %50, %cst {dimension_numbers = #tpu.dot_dimension_numbers<[1], [0], [0], [1], [0, 0, 1, 1], [], []>} : vector<8x128xf32>, vector<128x128xf32>, vector<8x128xf32> -> vector<8x128xf32>
    %c0_20 = arith.constant 0 : index
    %c0_21 = arith.constant 0 : index
    %52 = vector.load %arg5[%c0_20, %c0_21] : memref<1x128xf32, #tpu.memory_space<vmem>>, vector<1x128xf32>
    %53 = vector.broadcast %52 : vector<1x128xf32> to vector<8x128xf32>
    %54 = arith.addf %51, %53 : vector<8x128xf32>
    %cst_22 = arith.constant 0.000000e+00 : f32
    %55 = vector.broadcast %cst_22 : f32 to vector<8x128xf32>
    %56 = arith.maximumf %54, %55 : vector<8x128xf32>
    %c0_23 = arith.constant 0 : index
    %c0_24 = arith.constant 0 : index
    %57 = vector.load %arg11[%c0_23, %c0_24] : memref<8x128xf32, #tpu.memory_space<vmem>>, vector<8x128xf32>
    %58 = arith.addf %56, %57 : vector<8x128xf32>
    %c0_25 = arith.constant 0 : index
    %c0_26 = arith.constant 0 : index
    %59 = vector.load %arg6[%c0_25, %c0_26] : memref<128x128xf32, #tpu.memory_space<vmem>>, vector<128x128xf32>
    %cst_27 = arith.constant dense<0.000000e+00> : vector<8x128xf32>
    %60 = tpu.matmul %58, %59, %cst_27 {dimension_numbers = #tpu.dot_dimension_numbers<[1], [0], [0], [1], [0, 0, 1, 1], [], []>} : vector<8x128xf32>, vector<128x128xf32>, vector<8x128xf32> -> vector<8x128xf32>
    %c0_28 = arith.constant 0 : index
    %c0_29 = arith.constant 0 : index
    %61 = vector.load %arg7[%c0_28, %c0_29] : memref<1x128xf32, #tpu.memory_space<vmem>>, vector<1x128xf32>
    %62 = vector.broadcast %61 : vector<1x128xf32> to vector<8x128xf32>
    %63 = arith.addf %60, %62 : vector<8x128xf32>
    %cst_30 = arith.constant 0.000000e+00 : f32
    %64 = vector.broadcast %cst_30 : f32 to vector<8x128xf32>
    %65 = arith.maximumf %63, %64 : vector<8x128xf32>
    %c0_31 = arith.constant 0 : index
    %c0_32 = arith.constant 0 : index
    %66 = vector.load %arg8[%c0_31, %c0_32] : memref<128x128xf32, #tpu.memory_space<vmem>>, vector<128x128xf32>
    %cst_33 = arith.constant dense<0.000000e+00> : vector<8x128xf32>
    %67 = tpu.matmul %65, %66, %cst_33 {dimension_numbers = #tpu.dot_dimension_numbers<[1], [0], [0], [1], [0, 0, 1, 1], [], []>} : vector<8x128xf32>, vector<128x128xf32>, vector<8x128xf32> -> vector<8x128xf32>
    %c0_34 = arith.constant 0 : index
    %c0_35 = arith.constant 0 : index
    %68 = vector.load %arg9[%c0_34, %c0_35] : memref<1x128xf32, #tpu.memory_space<vmem>>, vector<1x128xf32>
    %69 = vector.broadcast %68 : vector<1x128xf32> to vector<8x128xf32>
    %70 = arith.addf %67, %69 : vector<8x128xf32>
    %c0_36 = arith.constant 0 : index
    %c0_37 = arith.constant 0 : index
    %71 = vector.load %arg10[%c0_36, %c0_37] : memref<8x128xf32, #tpu.memory_space<vmem>>, vector<8x128xf32>
    tpu.vector_store %arg10[%c0_36, %c0_37], %70 {strides = array<i32>} : memref<8x128xf32, #tpu.memory_space<vmem>>, vector<8x128xf32>,
    return
  }
  func.func @transform_0(%arg0: i32, %arg1: memref<8xi32, #tpu.memory_space<smem>>) -> (i32, i32) {
    %c0_i32 = arith.constant 0 : i32
    %c0_i32_0 = arith.constant 0 : i32
    return %arg0, %c0_i32 : i32, i32
  }
  func.func @transform_1(%arg0: i32, %arg1: memref<8xi32, #tpu.memory_space<smem>>) -> (i32, i32) {
    %c0_i32 = arith.constant 0 : i32
    %c0_i32_0 = arith.constant 0 : i32
    %c0_i32_1 = arith.constant 0 : i32
    return %c0_i32, %c0_i32_0 : i32, i32
  }
  func.func @transform_2(%arg0: i32, %arg1: memref<8xi32, #tpu.memory_space<smem>>) -> (i32, i32) {
    %c0_i32 = arith.constant 0 : i32
    %c0_i32_0 = arith.constant 0 : i32
    %c0_i32_1 = arith.constant 0 : i32
    return %c0_i32, %c0_i32_0 : i32, i32
  }
  func.func @transform_3(%arg0: i32, %arg1: memref<8xi32, #tpu.memory_space<smem>>) -> (i32, i32) {
    %c0_i32 = arith.constant 0 : i32
    %c0_i32_0 = arith.constant 0 : i32
    %c0_i32_1 = arith.constant 0 : i32
    return %c0_i32, %c0_i32_0 : i32, i32
  }
  func.func @transform_4(%arg0: i32, %arg1: memref<8xi32, #tpu.memory_space<smem>>) -> (i32, i32) {
    %c0_i32 = arith.constant 0 : i32
    %c0_i32_0 = arith.constant 0 : i32
    %c0_i32_1 = arith.constant 0 : i32
    return %c0_i32, %c0_i32_0 : i32, i32
  }
  func.func @transform_5(%arg0: i32, %arg1: memref<8xi32, #tpu.memory_space<smem>>) -> (i32, i32) {
    %c0_i32 = arith.constant 0 : i32
    %c0_i32_0 = arith.constant 0 : i32
    %c0_i32_1 = arith.constant 0 : i32
    return %c0_i32, %c0_i32_0 : i32, i32
  }
  func.func @transform_6(%arg0: i32, %arg1: memref<8xi32, #tpu.memory_space<smem>>) -> (i32, i32) {
    %c0_i32 = arith.constant 0 : i32
    %c0_i32_0 = arith.constant 0 : i32
    %c0_i32_1 = arith.constant 0 : i32
    return %c0_i32, %c0_i32_0 : i32, i32
  }
  func.func @transform_7(%arg0: i32, %arg1: memref<8xi32, #tpu.memory_space<smem>>) -> (i32, i32) {
    %c0_i32 = arith.constant 0 : i32
    %c0_i32_0 = arith.constant 0 : i32
    %c0_i32_1 = arith.constant 0 : i32
    return %c0_i32, %c0_i32_0 : i32, i32
  }
  func.func @transform_8(%arg0: i32, %arg1: memref<8xi32, #tpu.memory_space<smem>>) -> (i32, i32) {
    %c0_i32 = arith.constant 0 : i32
    %c0_i32_0 = arith.constant 0 : i32
    return %arg0, %c0_i32 : i32, i32
  }
}

</mosaic_0001>

<bundles_post_ra>
// kernel: denoiser_forward.1
= control target key start
LH: loop header
LB: loop body
LE: loop exit
PB: predicated region body
PF: predicated region fallthrough
CT: control target
= control target key end

     0   :  { %s1000_s0 = inlined_call_operand.vmem [shape: s32[8], index: 0, kind: input, shape index: {}]   ;;  %s1001_s1 = inlined_call_operand.vmem [shape: f32[8,128], index: 1, kind: input, shape index: {}]   ;;  %s1002_s2 = inlined_call_operand.vmem [shape: f32[16,128], index: 2, kind: input, shape index: {}]   ;;  %s1003_s3 = inlined_call_operand.hbm [shape: f32[128,128], index: 3, kind: input, shape index: {}]   ;;  %s1004_s4 = inlined_call_operand.vmem [shape: f32[1,128], index: 4, kind: input, shape index: {}]   ;;  %s1005_s5 = inlined_call_operand.hbm [shape: f32[128,128], index: 5, kind: input, shape index: {}]   ;;  %s1006_s6 = inlined_call_operand.vmem [shape: f32[1,128], index: 6, kind: input, shape index: {}]   ;;  %s1007_s7 = inlined_call_operand.hbm [shape: f32[128,128], index: 7, kind: input, shape index: {}]   ;;  %s1008_s8 = inlined_call_operand.vmem [shape: f32[1,128], index: 8, kind: input, shape index: {}]   ;;  %s1009_s9 = inlined_call_operand.hbm [shape: f32[8,128], index: 9, kind: output, shape index: {}]  }
   0x1   :  { %s14_s11 = sshll.u32 %s1000_s0, 4  ;;  %s15_s11 = int_to_ptr.vmem [resolvable:$true] %s14_s11 }
   0x2   :  { %s675_s12 = scalar_lea.vmem %s15_s11, 16  ;;  %p680_p1 = scmp.lt.s32.totalorder %s15_s11, %s15_s11 }
   0x3   :  { %p676_p0 = scmp.ne.s32.totalorder %s15_s11, %s675_s12  ;;  %p681_p2 = scmp.lt.s32.totalorder %s675_s12, %s675_s12 }
   0x5   :  { %p682_p3 = por %p681_p2, %p680_p1 }
   0x7   :  { %p683_p4 = pnand %p682_p3, %p676_p0 }
   0x9   :  { %686 = shalt.err (!%p683_p4)  }
   0xa   :  { %s783_s13 = smov [#allocation4]  }
   0xb   :  { %17 = dma.vmem_to_smem %s15_s11, 16, %s783_s13, [#allocation3] }
   0xc   :  { %775 = dma.done.wait [#allocation3], 16 }
   0xd   :  { %776 = vsyncadd [#allocation3], 4294967280 }
   0xe   :  { %19 = sfence }
   0xf   :  { %20 = vsyncpa [#allocation6], 0 }
  0x10   :  { %21 = vsyncpa [#allocation9], 0 }
  0x11   :  { %22 = vsyncpa [#allocation7], 0  ;;  %s784_s14 = smov [#allocation8]   ;;  %s785_s16 = smov [#allocation5]  }
  0x12   :  { %s46_s15 = sshll.u32 %s784_s14, 4  ;;  %s32_s0 = sshll.u32 %s785_s16, 4  ;;  %s47_s15 = int_to_ptr.vmem [resolvable:$true] %s46_s15  ;;  %s846_s0 = int_to_ptr.vmem [resolvable:$true] %s32_s0 }
  0x13   :  { %s687_s19 = scalar_lea.hbm %s1005_s5, 2048 }
  0x14   :  { %p688_p5 = scmp.ne.s32.totalorder %s1005_s5, %s687_s19  ;;  %p691_p6 = scmp.lt.u32.totalorder %s687_s19, %s1005_s5 }
  0x16   :  { %p693_p7 = pnand %p691_p6, %p688_p5 }
  0x18   :  { %696 = shalt.err (!%p693_p7)
}
  0x19   :  { %s697_s24 = scalar_lea.vmem %s47_s15, 2048  ;;  %p702_p9 = scmp.lt.s32.totalorder %s47_s15, %s47_s15 }
  0x1a   :  { %p698_p8 = scmp.ne.s32.totalorder %s47_s15, %s697_s24  ;;  %p703_p10 = scmp.lt.s32.totalorder %s697_s24, %s697_s24 }
  0x1c   :  { %p704_p11 = por %p703_p10, %p702_p9 }
  0x1e   :  { %p705_p12 = pnand %p704_p11, %p698_p8 }
  0x20   :  { %708 = shalt.err (!%p705_p12)
}
  0x21   :  { %s786_s25 = smov 128   ;;  %s787_s26 = smov 8  }
  0x22   :  { %52 = dma.hbm_to_vmem [thread:$0]  %s1005_s5, 2048, %s47_s15, [#allocation9], %s786_s25, %s786_s25, %s787_s26  }
  0x23   :  { %s709_s10 = scalar_lea.hbm %s1003_s3, 2048 }
  0x24   :  { %p710_p13 = scmp.ne.s32.totalorder %s1003_s3, %s709_s10  ;;  %p713_p0 = scmp.lt.u32.totalorder %s709_s10, %s1003_s3 }
  0x26   :  { %p715_p1 = pnand %p713_p0, %p710_p13 }
  0x28   :  { %718 = shalt.err (!%p715_p1)
}
  0x29   :  { %s719_s16 = scalar_lea.vmem %s846_s0, 2048  ;;  %p724_p3 = scmp.lt.s32.totalorder %s846_s0, %s846_s0 }
  0x2a   :  { %p720_p2 = scmp.ne.s32.totalorder %s846_s0, %s719_s16  ;;  %p725_p4 = scmp.lt.s32.totalorder %s719_s16, %s719_s16 }
  0x2c   :  { %p726_p5 = por %p725_p4, %p724_p3 }
  0x2e   :  { %p727_p6 = pnand %p726_p5, %p720_p2 }
  0x30   :  { %730 = shalt.err (!%p727_p6)
}
  0x31   :  { %38 = dma.hbm_to_vmem [thread:$0]  %s1003_s3, 2048, %s846_s0, [#allocation6], %s786_s25, %s786_s25, %s787_s26  }
  0x32   :  { %s788_s17 = smov [#allocation10]   ;;  %s731_s21 = scalar_lea.hbm %s1007_s7, 2048 }
  0x33   :  { %s60_s18 = sshll.u32 %s788_s17, 4  ;;  %p732_p7 = scmp.ne.s32.totalorder %s1007_s7, %s731_s21  ;;  %s61_s18 = int_to_ptr.vmem [resolvable:$true] %s60_s18 }
  0x34   :  { %p735_p8 = scmp.lt.u32.totalorder %s731_s21, %s1007_s7 }
  0x36   :  { %p737_p9 = pnand %p735_p8, %p732_p7 }
  0x38   :  { %740 = shalt.err (!%p737_p9)
}
  0x39   :  { %s741_s28 = scalar_lea.vmem %s61_s18, 2048  ;;  %p746_p11 = scmp.lt.s32.totalorder %s61_s18, %s61_s18 }
  0x3a   :  { %p742_p10 = scmp.ne.s32.totalorder %s61_s18, %s741_s28  ;;  %p747_p12 = scmp.lt.s32.totalorder %s741_s28, %s741_s28 }
  0x3c   :  { %p748_p13 = por %p747_p12, %p746_p11 }
  0x3e   :  { %p749_p0 = pnand %p748_p13, %p742_p10 }
  0x40   :  { %752 = shalt.err (!%p749_p0)
}
  0x41   :  { %66 = dma.hbm_to_vmem [thread:$0]  %s1007_s7, 2048, %s61_s18, [#allocation9], %s786_s25, %s786_s25, %s787_s26  }
  0x42   :  { %777 = dma.done.wait [#allocation6], 2048  }
  0x43   :  { %778 = vsyncadd [#allocation6], 4294965248 }
  0x44   :  { %779 = dma.done.wait [#allocation9], 4096  }
  0x45   :  { %780 = vsyncadd [#allocation9], 4294963200  ;;  %v789_v0 = vmov 0.0|0.0   ;;  %vm790_vm0 = vmmov 0   ;;  %v791_v1 = vmov 0.0   ;;  %s904_s29 = sld [smem:[#allocation4]] }
  0x46   :  { %593 = vmatprep.subr.bf16.mxu0 %v789_v0  ;;  %520 = vmatprep.mubr.msk.f32.mxu0 %vm790_vm0, %v791_v1  ;;  %s906_s7 = sld [smem:[#allocation4 + $0x1]]  ;;  %s908_s25 = sld [smem:[#allocation4 + $0x2]]  ;;  %v119_v2 = vld [vmem:[#allocation5] sm:$0xff]  ;;  %v120_v3 = vld [vmem:[#allocation5 + $0x8] sm:$0xff]  ;;  %v121_v4 = vld [vmem:[#allocation5 + $0x10] sm:$0xff] }
  0x47   :  { %617 = vmatprep.subr.bf16.mxu1 %v789_v0  ;;  %555 = vmatprep.mubr.msk.f32.mxu1 %vm790_vm0, %v791_v1  ;;  %s910_s26 = sld [smem:[#allocation4 + $0x3]]  ;;  %s912_s30 = sld [smem:[#allocation4 + $0x4]]  ;;  %v594_v5 = vpack.c.bf16 %v120_v3, %v119_v2  ;;  %v122_v6 = vld [vmem:[#allocation5 + $0x18] sm:$0xff]  ;;  %v123_v8 = vld [vmem:[#allocation5 + $0x20] sm:$0xff]  ;;  %v124_v9 = vld [vmem:[#allocation5 + $0x28] sm:$0xff] }
  0x48   :  { %s914_s10 = sld [smem:[#allocation4 + $0x5]]  ;;  %s916_s11 = sld [smem:[#allocation4 + $0x6]]  ;;  %v597_v7 = vpack.c.bf16 %v122_v6, %v121_v4  ;;  %v215_v10 = vld [vmem:[#allocation8] sm:$0xff]  ;;  %v216_v11 = vld [vmem:[#allocation8 + $0x8] sm:$0xff]  ;;  %v217_v12 = vld [vmem:[#allocation8 + $0x10] sm:$0xff]  ;;  %v600_v14 = vpack.c.bf16 %v124_v9, %v123_v8 }
  0x49   :  { %s918_s12 = sld [smem:[#allocation4 + $0x7]]  ;;  %595 = vmatpush3.bf16.msra.mxu0 %v594_v5  ;;  %v218_v13 = vld [vmem:[#allocation8 + $0x18] sm:$0xff]  ;;  %v618_v15 = vpack.c.bf16 %v216_v11, %v215_v10  ;;  %v125_v16 = vld [vmem:[#allocation5 + $0x30] sm:$0xff]  ;;  %v219_v19 = vld [vmem:[#allocation8 + $0x20] sm:$0xff]  ;;  %s792_s15 = smov [#allocation11]  }
  0x4a   :  { %596 = vmatprep.subr.bf16.mxu0 %v789_v0  ;;  %v126_v17 = vld [vmem:[#allocation5 + $0x38] sm:$0xff]  ;;  %v621_v18 = vpack.c.bf16 %v218_v13, %v217_v12  ;;  %v220_v20 = vld [vmem:[#allocation8 + $0x28] sm:$0xff]  ;;  %v127_v29 = vld [vmem:[#allocation5 + $0x40] sm:$0xff] }
  0x4b   :  { %s80_s16 = scalar_lea.vmem %s1002_s2, %s904_s29  ;;  %619 = vmatpush3.bf16.msra.mxu1 %v618_v15  ;;  %v603_v25 = vpack.c.bf16 %v126_v17, %v125_v16  ;;  %v128_v30 = vld [vmem:[#allocation5 + $0x48] sm:$0xff]  ;;  %v624_v32 = vpack.c.bf16 %v220_v20, %v219_v19  ;;  %v221_v33 = vld [vmem:[#allocation8 + $0x30] sm:$0xff]  ;;  %v222_v34 = vld [vmem:[#allocation8 + $0x38] sm:$0xff] }
  0x4c   :  { %s85_s17 = scalar_lea.vmem %s1002_s2, %s906_s7  ;;  %s90_s20 = scalar_lea.vmem %s1002_s2, %s908_s25  ;;  %v81_v21 = vld [vmem:[%s80_s16] sm:$0x1]  ;;  %620 = vmatprep.subr.bf16.mxu1 %v789_v0  ;;  %v606_v35 = vpack.c.bf16 %v128_v30, %v127_v29  ;;  %v129_v36 = vld [vmem:[#allocation5 + $0x50] sm:$0xff]  ;;  %v627_v38 = vpack.c.bf16 %v222_v34, %v221_v33  ;;  %v223_v39 = vld [vmem:[#allocation8 + $0x40] sm:$0xff] }
  0x4d   :  { %598 = vmatpush3.bf16.msra.mxu0 %v597_v7  ;;  %s95_s23 = scalar_lea.vmem %s1002_s2, %s910_s26  ;;  %s100_s28 = scalar_lea.vmem %s1002_s2, %s912_s30  ;;  %82 = vst [vmem:[#allocation2] sm:$0x1] %v81_v21  ;;  %v86_v22 = vld [vmem:[%s85_s17] sm:$0x1]  ;;  %v224_v40 = vld [vmem:[#allocation8 + $0x48] sm:$0xff]  ;;  %v131_v42 = vld [vmem:[#allocation5 + $0x60] sm:$0xff] }
  0x4e   :  { %599 = vmatprep.subr.bf16.mxu0 %v789_v0  ;;  %s105_s29 = scalar_lea.vmem %s1002_s2, %s914_s10  ;;  %s110_s13 = scalar_lea.vmem %s1002_s2, %s916_s11  ;;  %v91_v23 = vld [vmem:[%s90_s20] sm:$0x1]  ;;  %87 = vst [vmem:[#allocation2 + $0x1] sm:$0x1] %v86_v22  ;;  %v132_v43 = vld [vmem:[#allocation5 + $0x68] sm:$0xff]  ;;  %v630_v44 = vpack.c.bf16 %v224_v40, %v223_v39  ;;  %v225_v45 = vld [vmem:[#allocation8 + $0x50] sm:$0xff] }
  0x4f   :  { %s115_s30 = scalar_lea.vmem %s1002_s2, %s918_s12  ;;  %v96_v24 = vld [vmem:[%s95_s23] sm:$0x1]  ;;  %92 = vst [vmem:[#allocation2 + $0x2] sm:$0x1] %v91_v23  ;;  %622 = vmatpush3.bf16.msra.mxu1 %v621_v18  ;;  %v612_v47 = vpack.c.bf16 %v132_v43, %v131_v42  ;;  %v133_v48 = vld [vmem:[#allocation5 + $0x70] sm:$0xff]  ;;  %v227_v53 = vld [vmem:[#allocation8 + $0x60] sm:$0xff] }
  0x50   :  { %97 = vst [vmem:[#allocation2 + $0x3] sm:$0x1] %v96_v24  ;;  %v101_v26 = vld [vmem:[%s100_s28] sm:$0x1]  ;;  %623 = vmatprep.subr.bf16.mxu1 %v789_v0  ;;  %v228_v54 = vld [vmem:[#allocation8 + $0x68] sm:$0xff]  ;;  %v229_v56 = vld [vmem:[#allocation8 + $0x70] sm:$0xff] }
  0x51   :  { %601 = vmatpush3.bf16.msra.mxu0 %v600_v14  ;;  %v106_v27 = vld [vmem:[%s105_s29] sm:$0x1]  ;;  %102 = vst [vmem:[#allocation2 + $0x4] sm:$0x1] %v101_v26  ;;  %v636_v55 = vpack.c.bf16 %v228_v54, %v227_v53  ;;  %v309_v59 = vld [vmem:[#allocation10] sm:$0xff]  ;;  %v310_v60 = vld [vmem:[#allocation10 + $0x8] sm:$0xff] }
  0x52   :  { %v111_v28 = vld [vmem:[%s110_s13] sm:$0x1]  ;;  %602 = vmatprep.subr.bf16.mxu0 %v789_v0  ;;  %107 = vst [vmem:[#allocation2 + $0x5] sm:$0x1] %v106_v27  ;;  %v311_v61 = vld [vmem:[#allocation10 + $0x10] sm:$0xff]  ;;  %v642_v62 = vpack.c.bf16 %v310_v60, %v309_v59  ;;  %v314_v3 = vld [vmem:[#allocation10 + $0x28] sm:$0xff] }
  0x53   :  { %112 = vst [vmem:[#allocation2 + $0x6] sm:$0x1] %v111_v28  ;;  %v116_v31 = vld [vmem:[%s115_s30] sm:$0x1]  ;;  %625 = vmatpush3.bf16.msra.mxu1 %v624_v32  ;;  %v315_v5 = vld [vmem:[#allocation10 + $0x30] sm:$0xff]  ;;  %v317_v8 = vld [vmem:[#allocation10 + $0x40] sm:$0xff] }
  0x54   :  { %117 = vst [vmem:[#allocation2 + $0x7] sm:$0x1] %v116_v31  ;;  %v130_v37 = vld [vmem:[#allocation5 + $0x58] sm:$0xff]  ;;  %626 = vmatprep.subr.bf16.mxu1 %v789_v0  ;;  %v318_v9 = vld [vmem:[#allocation10 + $0x48] sm:$0xff]  ;;  %v319_v11 = vld [vmem:[#allocation10 + $0x50] sm:$0xff]  ;;  %s409_s17 = sshll.u32 %s792_s15, 4  ;;  %s410_s17 = int_to_ptr.vmem [resolvable:$true] %s409_s17 }
  0x55   :  { %604 = vmatpush3.bf16.msra.mxu0 %v603_v25  ;;  %v609_v41 = vpack.c.bf16 %v130_v37, %v129_v36  ;;  %v226_v46 = vld [vmem:[#allocation8 + $0x58] sm:$0xff]  ;;  %v654_v10 = vpack.c.bf16 %v318_v9, %v317_v8  ;;  %v321_v14 = vld [vmem:[#allocation10 + $0x60] sm:$0xff]  ;;  %v322_v15 = vld [vmem:[#allocation10 + $0x68] sm:$0xff]  ;;  %s753_s18 = scalar_lea.vmem %s410_s17, 128  ;;  %p758_p2 = scmp.lt.s32.totalorder %s410_s17, %s410_s17 }
  0x56   :  { %605 = vmatprep.subr.bf16.mxu0 %v789_v0  ;;  %v134_v49 = vld [vmem:[#allocation5 + $0x78] sm:$0xff]  ;;  %v633_v50 = vpack.c.bf16 %v226_v46, %v225_v45  ;;  %v660_v16 = vpack.c.bf16 %v322_v15, %v321_v14  ;;  %v323_v24 = vld [vmem:[#allocation10 + $0x70] sm:$0xff]  ;;  %p754_p1 = scmp.ne.s32.totalorder %s410_s17, %s753_s18  ;;  %p759_p3 = scmp.lt.s32.totalorder %s753_s18, %s753_s18 }
  0x57   :  { %628 = vmatpush3.bf16.msra.mxu1 %v627_v38  ;;  %v615_v51 = vpack.c.bf16 %v134_v49, %v133_v48  ;;  %v118_v52 = vld [vmem:[%s1001_s1] sm:$0xff] }
  0x58   :  { %629 = vmatprep.subr.bf16.mxu1 %v789_v0  ;;  %v230_v57 = vld [vmem:[#allocation8 + $0x78] sm:$0xff]  ;;  %p760_p4 = por %p759_p3, %p758_p2 }
  0x59   :  { %607 = vmatpush3.bf16.msra.mxu0 %v606_v35  ;;  %v639_v58 = vpack.c.bf16 %v230_v57, %v229_v56  ;;  %v312_v63 = vld [vmem:[#allocation10 + $0x18] sm:$0xff] }
  0x5a   :  { %608 = vmatprep.subr.bf16.mxu0 %v789_v0  ;;  %v645_v2 = vpack.c.bf16 %v312_v63, %v311_v61  ;;  %v316_v6 = vld [vmem:[#allocation10 + $0x38] sm:$0xff]  ;;  %p761_p5 = pnand %p760_p4, %p754_p1 }
  0x5b   :  { %631 = vmatpush3.bf16.msra.mxu1 %v630_v44  ;;  %v651_v7 = vpack.c.bf16 %v316_v6, %v315_v5  ;;  %v320_v12 = vld [vmem:[#allocation10 + $0x58] sm:$0xff] }
  0x5c   :  { %632 = vmatprep.subr.bf16.mxu1 %v789_v0  ;;  %v657_v13 = vpack.c.bf16 %v320_v12, %v319_v11  ;;  %v434_v17 = vld [vmem:[%s1004_s4] ss:$0 sm:$0xff] }
  0x5d   :  { %610 = vmatpush3.bf16.msra.mxu0 %v609_v41  ;;  %v213_v21 = vld [vmem:[#allocation2] sm:$0xff] }
  0x5e   :  { %611 = vmatprep.subr.bf16.mxu0 %v789_v0  ;;  %v324_v25 = vld [vmem:[#allocation10 + $0x78] sm:$0xff] }
  0x5f   :  { %634 = vmatpush3.bf16.msra.mxu1 %v633_v50  ;;  %v663_v26 = vpack.c.bf16 %v324_v25, %v323_v24  ;;  %v435_v27 = vld [vmem:[%s1006_s6] ss:$0 sm:$0xff] }
  0x60   :  { %635 = vmatprep.subr.bf16.mxu1 %v789_v0  ;;  %v436_v31 = vld [vmem:[%s1008_s8] ss:$0 sm:$0xff] }
  0x61   :  { %613 = vmatpush3.bf16.msra.mxu0 %v612_v47 }
  0x62   :  { %614 = vmatprep.subr.bf16.mxu0 %v789_v0 }
  0x63   :  { %637 = vmatpush3.bf16.msra.mxu1 %v636_v55 }
  0x64   :  { %638 = vmatprep.subr.bf16.mxu1 %v789_v0 }
  0x65   :  { %616 = vmatpush3.bf16.msra.mxu0 %v615_v51 }
  0x66   :  { %641 = vmatprep.subr.bf16.mxu0 %v789_v0 }
  0x67   :  { %640 = vmatpush3.bf16.msra.mxu1 %v639_v58 }
  0x68   :  { %521 = vmatmul.mubr.f32.vlgmr.msra.gmra.mrb[0].mxu0 %v118_v52 }
  0x69   :  { %590 = vmatprep.mubr.msk.f32.mxu0 %vm790_vm0, %v791_v1  ;;  %643 = vmatpush3.bf16.msra.mxu0 %v642_v62  ;;  %v313_v1 = vld [vmem:[#allocation10 + $0x20] sm:$0xff] }
  0x6a   :  { %644 = vmatprep.subr.bf16.mxu0 %v789_v0  ;;  %v648_v4 = vpack.c.bf16 %v314_v3, %v313_v1 }
  0x6d   :  { %646 = vmatpush3.bf16.msra.mxu0 %v645_v2 }
  0x6e   :  { %647 = vmatprep.subr.bf16.mxu0 %v789_v0 }
  0x71   :  { %649 = vmatpush3.bf16.msra.mxu0 %v648_v4 }
  0x72   :  { %650 = vmatprep.subr.bf16.mxu0 %v789_v0 }
  0x75   :  { %652 = vmatpush3.bf16.msra.mxu0 %v651_v7 }
  0x76   :  { %653 = vmatprep.subr.bf16.mxu0 %v789_v0 }
  0x79   :  { %655 = vmatpush3.bf16.msra.mxu0 %v654_v10 }
  0x7a   :  { %656 = vmatprep.subr.bf16.mxu0 %v789_v0 }
  0x7d   :  { %658 = vmatpush3.bf16.msra.mxu0 %v657_v13 }
  0x7e   :  { %659 = vmatprep.subr.bf16.mxu0 %v789_v0 }
  0x81   :  { %661 = vmatpush3.bf16.msra.mxu0 %v660_v16 }
  0x82   :  { %662 = vmatprep.subr.bf16.mxu0 %v789_v0 }
  0x85   :  { %664 = vmatpush3.bf16.msra.mxu0 %v663_v26 }
 0x13b   :  { %v208_v18 = vpop.f32.mrb[0].mxu0 }
 0x13c   :  { %v209_v19 = vadd.f32 %v434_v17, %v208_v18  ;;  %v522_v20 = vpop.f32.mrb[1].mxu0 }
 0x13e   :  { %v212_v22 = vmax.f32 %v209_v19, 0.0 }
 0x140   :  { %v214_v23 = vadd.f32 %v213_v21, %v212_v22 }
 0x142   :  { %556 = vmatmul.mubr.f32.vlgmr.msra.gmra.mrb[0].mxu1 %v214_v23 }
 0x215   :  { %v304_v0 = vpop.f32.mrb[0].mxu1 }
 0x216   :  { %v305_v28 = vadd.f32 %v435_v27, %v304_v0  ;;  %v557_v29 = vpop.f32.mrb[1].mxu1 }
 0x218   :  { %v308_v30 = vmax.f32 %v305_v28, 0.0 }
 0x21a   :  { %591 = vmatmul.mubr.f32.vlgmr.msra.gmra.mrb[2].mxu0 %v308_v30 }
 0x2ed   :  { %v398_v32 = vpop.f32.mrb[2].mxu0 }
 0x2ee   :  { %v399_v33 = vadd.f32 %v436_v31, %v398_v32  ;;  %v592_v34 = vpop.f32.mrb[3].mxu0 }
 0x2f0   :  { %402 = vst [vmem:[#allocation11] sm:$0xff] %v399_v33 }
 0x2f1   :  { %764 = shalt.err (!%p761_p5)
}
 0x2f2   :  { %s765_s20 = scalar_lea.hbm %s1009_s9, 128 }
 0x2f3   :  { %p766_p6 = scmp.ne.s32.totalorder %s1009_s9, %s765_s20  ;;  %p769_p7 = scmp.lt.u32.totalorder %s765_s20, %s1009_s9 }
 0x2f5   :  { %p771_p8 = pnand %p769_p7, %p766_p6 }
 0x2f7   :  { %774 = shalt.err (!%p771_p8)
}
 0x2f8   :  { %412 = dma.vmem_to_hbm [thread:$0]  %s410_s17, 128, %s1009_s9, [#allocation7]  }
 0x2f9   :  { %781 = dma.done.wait [#allocation7], 128  }
 0x2fa   :  { %782 = vsyncadd [#allocation7], 4294967168 }
 0x2fb   :  { %416 = vsyncpa [#allocation6], 1 }
 0x2fc   :  { %417 = vsyncpa [#allocation9], 1 }
 0x2fd   :  { %418 = vsyncpa [#allocation7], 1 }

</bundles_post_ra>
